<compile_context>
chip_gen: v7x
topology: tpu7x:2x2x1
jax: 0.10.0
libtpu: 0.0.40
codegen_flags: <defaults>
</compile_context>

<pallas_src>
import functools

import jax
import jax.numpy as jnp
from jax.experimental import pallas as pl
from jax.experimental.pallas import tpu as pltpu


# ----------------------------- hyper-parameters -----------------------------
class HyperParameters:
    inputs = 28 ** 2           # 784
    hidden_layer_1 = 256
    hidden_layer_2 = 128
    hidden_layer_3 = 64
    outputs = 10
    axis = 1
    dropout_probability = 0.2


OUT_PAD = 128                  # lane-dense padded logits width


def _round_up(a: int, m: int) -> int:
    return (a + m - 1) // m * m


# --------------------------------- kernel -----------------------------------
def _mlp_kernel(seed_ref,
                x_ref,
                w1_ref, b1_ref,
                w2_ref, b2_ref,
                w3_ref, b3_ref,
                w4_ref, b4_ref,
                out_ref,
                *, training: bool, drop_p: float):
    """Fused: 3x (Linear -> ReLU -> Dropout) -> Linear -> log_softmax (padded)."""

    def dropout(h, salt):
        if (not training) or drop_p <= 0.0:
            return h
        rows, cols = h.shape
        r = jax.lax.broadcasted_iota(jnp.int32, (rows, cols), 0).astype(jnp.uint32)
        c = jax.lax.broadcasted_iota(jnp.int32, (rows, cols), 1).astype(jnp.uint32)
        seed = seed_ref[0].astype(jnp.uint32)
        tile = pl.program_id(0).astype(jnp.uint32)
        key = (seed * jnp.uint32(0x9E3779B9)
               + tile * jnp.uint32(0x85EBCA6B)
               + jnp.uint32(salt) * jnp.uint32(0xC2B2AE35))
        bits = r * jnp.uint32(0x27D4EB2F) + c * jnp.uint32(0x165667B1) + key
        # murmur3-style finalizer mix (all plain uint32 VPU ops)
        bits = bits ^ (bits >> 16)
        bits = bits * jnp.uint32(0x7FEB352D)
        bits = bits ^ (bits >> 15)
        bits = bits * jnp.uint32(0x846CA68B)
        bits = bits ^ (bits >> 16)
        thresh = jnp.uint32(int(round(drop_p * 4294967296.0)) & 0xFFFFFFFF)
        keep = bits >= thresh                      # P(keep) = 1 - p
        scale = jnp.float32(1.0 / (1.0 - drop_p))
        return jnp.where(keep, h * scale, jnp.float32(0.0))

    # bf16 activations/weights into the MXU, f32 accumulation.
    x = x_ref[...]                                                   # (TB, 784) bf16
    h1 = jnp.maximum(
        jnp.dot(x, w1_ref[...], preferred_element_type=jnp.float32) + b1_ref[...],
        0.0)
    h1 = dropout(h1, 1)

    h2 = jnp.maximum(
        jnp.dot(h1.astype(jnp.bfloat16), w2_ref[...],
                preferred_element_type=jnp.float32) + b2_ref[...],
        0.0)
    h2 = dropout(h2, 2)

    h3 = jnp.maximum(
        jnp.dot(h2.astype(jnp.bfloat16), w3_ref[...],
                preferred_element_type=jnp.float32) + b3_ref[...],
        0.0)
    h3 = dropout(h3, 3)

    # Padded logits: pad columns of w4 are zero and pad bias is -1e30, so the
    # 118 pad lanes are ~ -inf and drop out of the max / logsumexp exactly.
    logits = (jnp.dot(h3.astype(jnp.bfloat16), w4_ref[...],
                      preferred_element_type=jnp.float32) + b4_ref[...])

    m = jnp.max(logits, axis=1, keepdims=True)
    lse = jnp.log(jnp.sum(jnp.exp(logits - m), axis=1, keepdims=True)) + m
    out_ref[...] = logits - lse


# ------------------------------- host wrapper --------------------------------
def dropout_model_forward(x, params, *, training=False, seed=0,
                          drop_p=HyperParameters.dropout_probability,
                          tile_batch=512):
    """x: (B, 1, 28, 28) or (B, 784) float32. Returns (B, 10) log-probabilities."""
    hp = HyperParameters
    B = x.shape[0]
    x2d = x.reshape(B, -1).astype(jnp.bfloat16)          # flatten + bf16 matmul input

    w1, b1, w2, b2, w3, b3, w4, b4 = params
    w1b = w1.astype(jnp.bfloat16)
    w2b = w2.astype(jnp.bfloat16)
    w3b = w3.astype(jnp.bfloat16)
    # Lane-dense padded last layer: (64, 128) weights, (1, 128) bias with -1e30 pads.
    w4p = jnp.zeros((hp.hidden_layer_3, OUT_PAD), jnp.bfloat16)
    w4p = w4p.at[:, :hp.outputs].set(w4.astype(jnp.bfloat16))
    b4p = jnp.full((1, OUT_PAD), -1e30, jnp.float32)
    b4p = b4p.at[:, :hp.outputs].set(b4.astype(jnp.float32))
    b1 = b1.astype(jnp.float32)
    b2 = b2.astype(jnp.float32)
    b3 = b3.astype(jnp.float32)

    # Batch tiling: TB rows per grid step (multiple of 8 sublanes).
    TB = min(int(tile_batch), _round_up(B, 8))
    Bp = _round_up(B, TB)
    if Bp != B:
        x2d = jnp.pad(x2d, ((0, Bp - B), (0, 0)))
    grid = (Bp // TB,)

    seed_arr = jnp.asarray([seed], dtype=jnp.int32)
    kernel = functools.partial(_mlp_kernel, training=bool(training),
                               drop_p=float(drop_p))

    d_in, d1, d2, d3 = hp.inputs, hp.hidden_layer_1, hp.hidden_layer_2, hp.hidden_layer_3
    flops = 2 * Bp * (d_in * d1 + d1 * d2 + d2 * d3 + d3 * OUT_PAD)
    bytes_accessed = (2 * (d_in * d1 + d1 * d2 + d2 * d3 + d3 * OUT_PAD)   # bf16 weights
                      + 4 * (d1 + d2 + d3 + OUT_PAD)                        # f32 biases
                      + 2 * Bp * d_in + 4 * Bp * OUT_PAD)                   # x in, out

    out = pl.pallas_call(
        kernel,
        out_shape=jax.ShapeDtypeStruct((Bp, OUT_PAD), jnp.float32),
        grid=grid,
        in_specs=[
            pl.BlockSpec(memory_space=pltpu.MemorySpace.SMEM),          # seed
            pl.BlockSpec((TB, d_in), lambda i: (i, 0)),                 # x tile
            pl.BlockSpec((d_in, d1), lambda i: (0, 0)),                 # w1 (resident)
            pl.BlockSpec((1, d1), lambda i: (0, 0)),                    # b1
            pl.BlockSpec((d1, d2), lambda i: (0, 0)),                   # w2
            pl.BlockSpec((1, d2), lambda i: (0, 0)),                    # b2
            pl.BlockSpec((d2, d3), lambda i: (0, 0)),                   # w3
            pl.BlockSpec((1, d3), lambda i: (0, 0)),                    # b3
            pl.BlockSpec((d3, OUT_PAD), lambda i: (0, 0)),              # w4 (padded)
            pl.BlockSpec((1, OUT_PAD), lambda i: (0, 0)),               # b4 (padded)
        ],
        out_specs=pl.BlockSpec((TB, OUT_PAD), lambda i: (i, 0)),        # lane-dense
        compiler_params=pltpu.CompilerParams(
            dimension_semantics=("parallel",),
            vmem_limit_bytes=32 * 1024 * 1024),
        cost_estimate=pl.CostEstimate(flops=flops,
                                      transcendentals=Bp * OUT_PAD,
                                      bytes_accessed=bytes_accessed),
    )(seed_arr, x2d, w1b, b1, w2b, b2, w3b, b3, w4p, b4p)

    return out[:B, :hp.outputs]


# --------------------------- deterministic params ----------------------------
def init_params(key):
    """PyTorch-style Linear init: U(-1/sqrt(fan_in), 1/sqrt(fan_in)).

    Weights are stored transposed relative to torch: shape (in, out).
    Biases are stored as (1, out) so they broadcast cleanly inside the kernel.
    """
    hp = HyperParameters
    dims = [hp.inputs, hp.hidden_layer_1, hp.hidden_layer_2,
            hp.hidden_layer_3, hp.outputs]
    params = []
    for fan_in, fan_out in zip(dims[:-1], dims[1:]):
        key, kw, kb = jax.random.split(key, 3)
        bound = 1.0 / (fan_in ** 0.5)
        w = jax.random.uniform(kw, (fan_in, fan_out), jnp.float32, -bound, bound)
        b = jax.random.uniform(kb, (1, fan_out), jnp.float32, -bound, bound)
        params += [w, b]
    return tuple(params)


# ----------------------------------- main ------------------------------------
if __name__ == "__main__":
    key = jax.random.PRNGKey(0)
    key, kx = jax.random.split(key)

    batch = 8
    x = jax.random.normal(kx, (batch, 1, 28, 28), dtype=jnp.float32)
    params = init_params(key)

    # Eval-mode forward (dropout = identity), matching module.eval() semantics.
    out = jax.block_until_ready(dropout_model_forward(x, params, training=False))
    assert out.shape == (batch, HyperParameters.outputs)

    # Pure-JAX reference (same bf16-input / f32-accumulate matmul recipe).
    x2d = x.reshape(batch, -1)
    w1, b1, w2, b2, w3, b3, w4, b4 = params

    def mm(a, w):
        return jnp.dot(a.astype(jnp.bfloat16), w.astype(jnp.bfloat16),
                       preferred_element_type=jnp.float32)

    h = jnp.maximum(mm(x2d, w1) + b1, 0.0)
    h = jnp.maximum(mm(h, w2) + b2, 0.0)
    h = jnp.maximum(mm(h, w3) + b3, 0.0)
    logits = mm(h, w4) + b4
    ref = jax.nn.log_softmax(logits, axis=1)
    err = float(jnp.max(jnp.abs(out - ref)))
    assert jnp.allclose(out, ref, atol=3e-2, rtol=3e-2), f"max err {err}"

    # Training-mode forward: dropout active, per-tile/per-layer independent masks.
    out_train = jax.block_until_ready(
        dropout_model_forward(x, params, training=True, seed=123))
    assert out_train.shape == (batch, HyperParameters.outputs)
    assert bool(jnp.isfinite(out_train).all())
    assert not bool(jnp.allclose(out_train, out, atol=1e-6))  # dropout did something

    print("KERNEL_OK")
</pallas_src>

<mosaic_0001>
module attributes {stable_mosaic.version = 11 : i64} {
  func.func @_mlp_kernel(%arg0: i32, %arg1: memref<1xi32, #tpu.memory_space<smem>>, %arg2: memref<8x784xbf16, #tpu.memory_space<vmem>>, %arg3: memref<784x256xbf16, #tpu.memory_space<vmem>>, %arg4: memref<1x256xf32, #tpu.memory_space<vmem>>, %arg5: memref<256x128xbf16, #tpu.memory_space<vmem>>, %arg6: memref<1x128xf32, #tpu.memory_space<vmem>>, %arg7: memref<128x64xbf16, #tpu.memory_space<vmem>>, %arg8: memref<1x64xf32, #tpu.memory_space<vmem>>, %arg9: memref<64x128xbf16, #tpu.memory_space<vmem>>, %arg10: memref<1x128xf32, #tpu.memory_space<vmem>>, %arg11: memref<8x128xf32, #tpu.memory_space<vmem>>) attributes {dimension_semantics = [#tpu.dimension_semantics<parallel>], iteration_bounds = array<i64: 1>, scalar_prefetch = 0 : i64, scratch_operands = 0 : i64, tpu.core_type = #tpu.core_type<tc>, window_params = [{transform_indices = @transform_0, window_bounds = array<i64: 1>}, {transform_indices = @transform_1, window_bounds = array<i64: 8, 784>}, {pipeline_mode = #tpu.pipeline_mode<synchronous>, transform_indices = @transform_2, window_bounds = array<i64: 784, 256>}, {pipeline_mode = #tpu.pipeline_mode<synchronous>, transform_indices = @transform_3, window_bounds = array<i64: 1, 256>}, {pipeline_mode = #tpu.pipeline_mode<synchronous>, transform_indices = @transform_4, window_bounds = array<i64: 256, 128>}, {pipeline_mode = #tpu.pipeline_mode<synchronous>, transform_indices = @transform_5, window_bounds = array<i64: 1, 128>}, {pipeline_mode = #tpu.pipeline_mode<synchronous>, transform_indices = @transform_6, window_bounds = array<i64: 128, 64>}, {pipeline_mode = #tpu.pipeline_mode<synchronous>, transform_indices = @transform_7, window_bounds = array<i64: 1, 64>}, {pipeline_mode = #tpu.pipeline_mode<synchronous>, transform_indices = @transform_8, window_bounds = array<i64: 64, 128>}, {pipeline_mode = #tpu.pipeline_mode<synchronous>, transform_indices = @transform_9, window_bounds = array<i64: 1, 128>}, {transform_indices = @transform_10, window_bounds = array<i64: 8, 128>}]} {
    %c0 = arith.constant 0 : index
    %c0_0 = arith.constant 0 : index
    %0 = vector.load %arg2[%c0, %c0_0] : memref<8x784xbf16, #tpu.memory_space<vmem>>, vector<8x784xbf16>
    %c0_1 = arith.constant 0 : index
    %c0_2 = arith.constant 0 : index
    %1 = vector.load %arg3[%c0_1, %c0_2] : memref<784x256xbf16, #tpu.memory_space<vmem>>, vector<784x256xbf16>
    %cst = arith.constant dense<0.000000e+00> : vector<8x256xf32>
    %2 = tpu.matmul %0, %1, %cst {dimension_numbers = #tpu.dot_dimension_numbers<[1], [0], [0], [1], [0, 0, 1, 1], [], []>} : vector<8x784xbf16>, vector<784x256xbf16>, vector<8x256xf32> -> vector<8x256xf32>
    %c0_3 = arith.constant 0 : index
    %c0_4 = arith.constant 0 : index
    %3 = vector.load %arg4[%c0_3, %c0_4] : memref<1x256xf32, #tpu.memory_space<vmem>>, vector<1x256xf32>
    %4 = vector.broadcast %3 : vector<1x256xf32> to vector<8x256xf32>
    %5 = arith.addf %2, %4 : vector<8x256xf32>
    %cst_5 = arith.constant 0.000000e+00 : f32
    %6 = vector.broadcast %cst_5 : f32 to vector<8x256xf32>
    %7 = arith.maximumf %5, %6 : vector<8x256xf32>
    %8 = arith.truncf %7 : vector<8x256xf32> to vector<8x256xbf16>
    %c0_6 = arith.constant 0 : index
    %c0_7 = arith.constant 0 : index
    %9 = vector.load %arg5[%c0_6, %c0_7] : memref<256x128xbf16, #tpu.memory_space<vmem>>, vector<256x128xbf16>
    %cst_8 = arith.constant dense<0.000000e+00> : vector<8x128xf32>
    %10 = tpu.matmul %8, %9, %cst_8 {dimension_numbers = #tpu.dot_dimension_numbers<[1], [0], [0], [1], [0, 0, 1, 1], [], []>} : vector<8x256xbf16>, vector<256x128xbf16>, vector<8x128xf32> -> vector<8x128xf32>
    %c0_9 = arith.constant 0 : index
    %c0_10 = arith.constant 0 : index
    %11 = vector.load %arg6[%c0_9, %c0_10] : memref<1x128xf32, #tpu.memory_space<vmem>>, vector<1x128xf32>
    %12 = vector.broadcast %11 : vector<1x128xf32> to vector<8x128xf32>
    %13 = arith.addf %10, %12 : vector<8x128xf32>
    %cst_11 = arith.constant 0.000000e+00 : f32
    %14 = vector.broadcast %cst_11 : f32 to vector<8x128xf32>
    %15 = arith.maximumf %13, %14 : vector<8x128xf32>
    %16 = arith.truncf %15 : vector<8x128xf32> to vector<8x128xbf16>
    %c0_12 = arith.constant 0 : index
    %c0_13 = arith.constant 0 : index
    %17 = vector.load %arg7[%c0_12, %c0_13] : memref<128x64xbf16, #tpu.memory_space<vmem>>, vector<128x64xbf16>
    %cst_14 = arith.constant dense<0.000000e+00> : vector<8x64xf32>
    %18 = tpu.matmul %16, %17, %cst_14 {dimension_numbers = #tpu.dot_dimension_numbers<[1], [0], [0], [1], [0, 0, 1, 1], [], []>} : vector<8x128xbf16>, vector<128x64xbf16>, vector<8x64xf32> -> vector<8x64xf32>
    %c0_15 = arith.constant 0 : index
    %c0_16 = arith.constant 0 : index
    %19 = vector.load %arg8[%c0_15, %c0_16] : memref<1x64xf32, #tpu.memory_space<vmem>>, vector<1x64xf32>
    %20 = vector.broadcast %19 : vector<1x64xf32> to vector<8x64xf32>
    %21 = arith.addf %18, %20 : vector<8x64xf32>
    %cst_17 = arith.constant 0.000000e+00 : f32
    %22 = vector.broadcast %cst_17 : f32 to vector<8x64xf32>
    %23 = arith.maximumf %21, %22 : vector<8x64xf32>
    %24 = arith.truncf %23 : vector<8x64xf32> to vector<8x64xbf16>
    %c0_18 = arith.constant 0 : index
    %c0_19 = arith.constant 0 : index
    %25 = vector.load %arg9[%c0_18, %c0_19] : memref<64x128xbf16, #tpu.memory_space<vmem>>, vector<64x128xbf16>
    %cst_20 = arith.constant dense<0.000000e+00> : vector<8x128xf32>
    %26 = tpu.matmul %24, %25, %cst_20 {dimension_numbers = #tpu.dot_dimension_numbers<[1], [0], [0], [1], [0, 0, 1, 1], [], []>} : vector<8x64xbf16>, vector<64x128xbf16>, vector<8x128xf32> -> vector<8x128xf32>
    %c0_21 = arith.constant 0 : index
    %c0_22 = arith.constant 0 : index
    %27 = vector.load %arg10[%c0_21, %c0_22] : memref<1x128xf32, #tpu.memory_space<vmem>>, vector<1x128xf32>
    %28 = vector.broadcast %27 : vector<1x128xf32> to vector<8x128xf32>
    %29 = arith.addf %26, %28 : vector<8x128xf32>
    %cst_23 = arith.constant dense<0xFF800000> : vector<8xf32>
    %30 = vector.multi_reduction <maximumf>, %29, %cst_23 [1] : vector<8x128xf32> to vector<8xf32>
    %31 = vector.shape_cast %30 : vector<8xf32> to vector<8x1xf32>
    %32 = vector.broadcast %31 : vector<8x1xf32> to vector<8x128xf32>
    %33 = arith.subf %29, %32 : vector<8x128xf32>
    %34 = math.exp %33 : vector<8x128xf32>
    %cst_24 = arith.constant dense<0.000000e+00> : vector<8xf32>
    %35 = vector.multi_reduction <add>, %34, %cst_24 [1] : vector<8x128xf32> to vector<8xf32>
    %36 = vector.shape_cast %35 : vector<8xf32> to vector<8x1xf32>
    %37 = math.log %36 : vector<8x1xf32>
    %38 = arith.addf %37, %31 : vector<8x1xf32>
    %39 = vector.broadcast %38 : vector<8x1xf32> to vector<8x128xf32>
    %40 = arith.subf %29, %39 : vector<8x128xf32>
    %c0_25 = arith.constant 0 : index
    %c0_26 = arith.constant 0 : index
    %41 = vector.load %arg11[%c0_25, %c0_26] : memref<8x128xf32, #tpu.memory_space<vmem>>, vector<8x128xf32>
    tpu.vector_store %arg11[%c0_25, %c0_26], %40 {strides = array<i32>} : memref<8x128xf32, #tpu.memory_space<vmem>>, vector<8x128xf32>,
    return
  }
  func.func @transform_0(%arg0: i32) -> i32 {
    %c0_i32 = arith.constant 0 : i32
    %c0_i32_0 = arith.constant 0 : i32
    return %c0_i32 : i32
  }
  func.func @transform_1(%arg0: i32) -> (i32, i32) {
    %c0_i32 = arith.constant 0 : i32
    %c0_i32_0 = arith.constant 0 : i32
    return %arg0, %c0_i32 : i32, i32
  }
  func.func @transform_2(%arg0: i32) -> (i32, i32) {
    %c0_i32 = arith.constant 0 : i32
    %c0_i32_0 = arith.constant 0 : i32
    %c0_i32_1 = arith.constant 0 : i32
    return %c0_i32, %c0_i32_0 : i32, i32
  }
  func.func @transform_3(%arg0: i32) -> (i32, i32) {
    %c0_i32 = arith.constant 0 : i32
    %c0_i32_0 = arith.constant 0 : i32
    %c0_i32_1 = arith.constant 0 : i32
    return %c0_i32, %c0_i32_0 : i32, i32
  }
  func.func @transform_4(%arg0: i32) -> (i32, i32) {
    %c0_i32 = arith.constant 0 : i32
    %c0_i32_0 = arith.constant 0 : i32
    %c0_i32_1 = arith.constant 0 : i32
    return %c0_i32, %c0_i32_0 : i32, i32
  }
  func.func @transform_5(%arg0: i32) -> (i32, i32) {
    %c0_i32 = arith.constant 0 : i32
    %c0_i32_0 = arith.constant 0 : i32
    %c0_i32_1 = arith.constant 0 : i32
    return %c0_i32, %c0_i32_0 : i32, i32
  }
  func.func @transform_6(%arg0: i32) -> (i32, i32) {
    %c0_i32 = arith.constant 0 : i32
    %c0_i32_0 = arith.constant 0 : i32
    %c0_i32_1 = arith.constant 0 : i32
    return %c0_i32, %c0_i32_0 : i32, i32
  }
  func.func @transform_7(%arg0: i32) -> (i32, i32) {
    %c0_i32 = arith.constant 0 : i32
    %c0_i32_0 = arith.constant 0 : i32
    %c0_i32_1 = arith.constant 0 : i32
    return %c0_i32, %c0_i32_0 : i32, i32
  }
  func.func @transform_8(%arg0: i32) -> (i32, i32) {
    %c0_i32 = arith.constant 0 : i32
    %c0_i32_0 = arith.constant 0 : i32
    %c0_i32_1 = arith.constant 0 : i32
    return %c0_i32, %c0_i32_0 : i32, i32
  }
  func.func @transform_9(%arg0: i32) -> (i32, i32) {
    %c0_i32 = arith.constant 0 : i32
    %c0_i32_0 = arith.constant 0 : i32
    %c0_i32_1 = arith.constant 0 : i32
    return %c0_i32, %c0_i32_0 : i32, i32
  }
  func.func @transform_10(%arg0: i32) -> (i32, i32) {
    %c0_i32 = arith.constant 0 : i32
    %c0_i32_0 = arith.constant 0 : i32
    return %arg0, %c0_i32 : i32, i32
  }
}

</mosaic_0001>

<bundles_post_ra>
// kernel: tpu_custom_call.1
= control target key start
LH: loop header
LB: loop body
LE: loop exit
PB: predicated region body
PF: predicated region fallthrough
CT: control target
= control target key end

     0   :  { %16 = vsyncpa [#allocation4], 0  ;;  %s1940_s0 = inlined_call_operand.<no memory space> [shape: s32[1], index: 0, kind: input, shape index: {}]   ;;  %s1941_s1 = inlined_call_operand.vmem [shape: bf16[8,784], index: 1, kind: input, shape index: {}]   ;;  %s1942_s2 = inlined_call_operand.hbm [shape: bf16[784,256], index: 2, kind: input, shape index: {}]   ;;  %s1943_s3 = inlined_call_operand.vmem [shape: f32[1,256], index: 3, kind: input, shape index: {}]   ;;  %s1944_s4 = inlined_call_operand.hbm [shape: bf16[256,128], index: 4, kind: input, shape index: {}]   ;;  %s1945_s5 = inlined_call_operand.vmem [shape: f32[1,128], index: 5, kind: input, shape index: {}]   ;;  %s1946_s6 = inlined_call_operand.vmem [shape: bf16[128,64], index: 6, kind: input, shape index: {}]   ;;  %s1947_s7 = inlined_call_operand.vmem [shape: f32[1,64], index: 7, kind: input, shape index: {}]   ;;  %s1948_s8 = inlined_call_operand.vmem [shape: bf16[64,128], index: 8, kind: input, shape index: {}]   ;;  %s1949_s9 = inlined_call_operand.vmem [shape: f32[1,128], index: 9, kind: input, shape index: {}]   ;;  %s1950_s10 = inlined_call_operand.hbm [shape: f32[8,128], index: 10, kind: output, shape index: {}]  }
   0x1   :  { %17 = vsyncpa [#allocation7], 0 }
   0x2   :  { %18 = vsyncpa [#allocation5], 0  ;;  %s1753_s12 = smov [#allocation3]   ;;  %s1681_s16 = scalar_lea.hbm %s1942_s2, 12544 }
   0x3   :  { %s28_s13 = sshll.u32 %s1753_s12, 4  ;;  %p1682_p0 = scmp.ne.s32.totalorder %s1942_s2, %s1681_s16  ;;  %s29_s13 = int_to_ptr.vmem [resolvable:$true] %s28_s13 }
   0x4   :  { %p1685_p1 = scmp.lt.u32.totalorder %s1681_s16, %s1942_s2 }
   0x6   :  { %p1687_p2 = pnand %p1685_p1, %p1682_p0 }
   0x8   :  { %1690 = shalt.err (!%p1687_p2)
}
   0x9   :  { %s1691_s21 = scalar_lea.vmem %s29_s13, 12544  ;;  %p1696_p4 = scmp.lt.s32.totalorder %s29_s13, %s29_s13 }
   0xa   :  { %p1692_p3 = scmp.ne.s32.totalorder %s29_s13, %s1691_s21  ;;  %p1697_p5 = scmp.lt.s32.totalorder %s1691_s21, %s1691_s21 }
   0xc   :  { %p1698_p6 = por %p1697_p5, %p1696_p4 }
   0xe   :  { %p1699_p7 = pnand %p1698_p6, %p1692_p3 }
  0x10   :  { %1702 = shalt.err (!%p1699_p7)
}
  0x11   :  { %s1754_s22 = smov 128   ;;  %s1755_s23 = smov 8  }
  0x12   :  { %34 = dma.hbm_to_vmem [thread:$0]  %s1942_s2, 12544, %s29_s13, [#allocation4], %s1754_s22, %s1754_s22, %s1755_s23  }
  0x13   :  { %s1756_s0 = smov [#allocation6]   ;;  %s1703_s29 = scalar_lea.hbm %s1944_s4, 2048 }
  0x14   :  { %s42_s26 = sshll.u32 %s1756_s0, 4  ;;  %p1704_p8 = scmp.ne.s32.totalorder %s1944_s4, %s1703_s29  ;;  %s43_s26 = int_to_ptr.vmem [resolvable:$true] %s42_s26 }
  0x15   :  { %p1707_p9 = scmp.lt.u32.totalorder %s1703_s29, %s1944_s4 }
  0x17   :  { %p1709_p10 = pnand %p1707_p9, %p1704_p8 }
  0x19   :  { %1712 = shalt.err (!%p1709_p10)
}
  0x1a   :  { %s1713_s15 = scalar_lea.vmem %s43_s26, 2048  ;;  %p1718_p12 = scmp.lt.s32.totalorder %s43_s26, %s43_s26 }
  0x1b   :  { %p1714_p11 = scmp.ne.s32.totalorder %s43_s26, %s1713_s15  ;;  %p1719_p13 = scmp.lt.s32.totalorder %s1713_s15, %s1713_s15 }
  0x1d   :  { %p1720_p0 = por %p1719_p13, %p1718_p12 }
  0x1f   :  { %p1721_p1 = pnand %p1720_p0, %p1714_p11 }
  0x21   :  { %1724 = shalt.err (!%p1721_p1)
}
  0x22   :  { %s1757_s2 = smov 64   ;;  %s1758_s13 = smov 4  }
  0x23   :  { %48 = dma.hbm_to_vmem [thread:$0]  %s1944_s4, 2048, %s43_s26, [#allocation7], %s1757_s2, %s1757_s2, %s1758_s13  }
  0x24   :  { %1747 = dma.done.wait [#allocation4], 12544  }
  0x25   :  { %1748 = vsyncadd [#allocation4], 4294954752 }
  0x26   :  { %1749 = dma.done.wait [#allocation7], 2048  }
  0x27   :  { %1750 = vsyncadd [#allocation7], 4294965248  ;;  %v1495_v0 = vld [vmem:[#allocation3 + $0x104] ss:$8 sps:$4 sm:$0xff]   ;;  %v1497_v1 = vld [vmem:[#allocation3 + $0x100] ss:$8 sps:$4 sm:$0xff]  }
  0x28   :  { %739 = vmatprep.subr.bf16.mxu0 %v1495_v0  ;;  %v1498_v2 = vld [vmem:[#allocation3 + $0x114] ss:$8 sps:$4 sm:$0xff]   ;;  %v1500_v3 = vld [vmem:[#allocation3 + $0x110] ss:$8 sps:$4 sm:$0xff]   ;;  %v1501_v4 = vld [vmem:[#allocation3 + $0x124] ss:$8 sps:$4 sm:$0xff]  }
  0x29   :  { %740 = vmatpush1.bf16.msra.mxu0 %v1497_v1  ;;  %v1503_v5 = vld [vmem:[#allocation3 + $0x120] ss:$8 sps:$4 sm:$0xff]   ;;  %v1504_v6 = vld [vmem:[#allocation3 + $0x134] ss:$8 sps:$4 sm:$0xff]   ;;  %v1506_v7 = vld [vmem:[#allocation3 + $0x130] ss:$8 sps:$4 sm:$0xff]  }
  0x2a   :  { %741 = vmatprep.subr.bf16.mxu0 %v1498_v2  ;;  %v1507_v8 = vld [vmem:[#allocation3 + $0x144] ss:$8 sps:$4 sm:$0xff]   ;;  %v1509_v9 = vld [vmem:[#allocation3 + $0x140] ss:$8 sps:$4 sm:$0xff]   ;;  %v1510_v10 = vld [vmem:[#allocation3 + $0x154] ss:$8 sps:$4 sm:$0xff]  }
  0x2b   :  { %v1512_v11 = vld [vmem:[#allocation3 + $0x150] ss:$8 sps:$4 sm:$0xff]   ;;  %v1513_v12 = vld [vmem:[#allocation3 + $0x164] ss:$8 sps:$4 sm:$0xff]   ;;  %v1515_v15 = vld [vmem:[#allocation3 + $0x160] ss:$8 sps:$4 sm:$0xff]  }
  0x2c   :  { %v1845_v13 = vld [vmem:[%s1941_s1 + $0x8] sm:$0xff]  ;;  %v1516_v16 = vld [vmem:[#allocation3 + $0x174] ss:$8 sps:$4 sm:$0xff]   ;;  %v1518_v18 = vld [vmem:[#allocation3 + $0x170] ss:$8 sps:$4 sm:$0xff]   ;;  %vm694_vm0 = vcmask 130048  }
  0x2d   :  { %742 = vmatpush1.bf16.msra.mxu0 %v1500_v3  ;;  %v1270_v14 = vcombine.high %v1845_v13, %v1845_v13  ;;  %v1551_v17 = vld [vmem:[#allocation3 + $0x4] ss:$8 sps:$4 sm:$0xff]   ;;  %v1556_v19 = vld [vmem:[#allocation3] ss:$8 sps:$4 sm:$0xff]   ;;  %v1557_v20 = vld [vmem:[#allocation3 + $0x14] ss:$8 sps:$4 sm:$0xff]   ;;  %v1269_v57 = vcombine.low %v1845_v13, %v1845_v13 }
  0x2e   :  { %743 = vmatprep.subr.bf16.mxu0 %v1501_v4  ;;  %698 = vmatprep.subr.bf16.mxu1 %v1551_v17  ;;  %v1519_v21 = vld [vmem:[#allocation3 + $0x184] ss:$8 sps:$4 sm:$0xff]   ;;  %v1562_v22 = vld [vmem:[#allocation3 + $0x10] ss:$8 sps:$4 sm:$0xff]   ;;  %v1521_v24 = vld [vmem:[#allocation3 + $0x180] ss:$8 sps:$4 sm:$0xff]  }
  0x2f   :  { %771 = vmatprep.mubr.bf16.mxu0 %v1270_v14  ;;  %699 = vmatpush1.bf16.msra.mxu1 %v1556_v19  ;;  %v1563_v23 = vld [vmem:[#allocation3 + $0x24] ss:$8 sps:$4 sm:$0xff]   ;;  %v1522_v25 = vld [vmem:[#allocation3 + $0x194] ss:$8 sps:$4 sm:$0xff]   ;;  %v1568_v26 = vld [vmem:[#allocation3 + $0x20] ss:$8 sps:$4 sm:$0xff]  }
  0x30   :  { %700 = vmatprep.subr.bf16.mxu1 %v1557_v20  ;;  %v1569_v27 = vld [vmem:[#allocation3 + $0x34] ss:$8 sps:$4 sm:$0xff]   ;;  %v1524_v28 = vld [vmem:[#allocation3 + $0x190] ss:$8 sps:$4 sm:$0xff]   ;;  %v1525_v29 = vld [vmem:[#allocation3 + $0x1a4] ss:$8 sps:$4 sm:$0xff]  }
  0x31   :  { %744 = vmatpush1.bf16.msra.mxu0 %v1503_v5  ;;  %v1574_v30 = vld [vmem:[#allocation3 + $0x30] ss:$8 sps:$4 sm:$0xff]   ;;  %v1575_v31 = vld [vmem:[#allocation3 + $0x44] ss:$8 sps:$4 sm:$0xff]   ;;  %v1527_v32 = vld [vmem:[#allocation3 + $0x1a0] ss:$8 sps:$4 sm:$0xff]  }
  0x32   :  { %745 = vmatprep.subr.bf16.mxu0 %v1504_v6  ;;  %v1528_v33 = vld [vmem:[#allocation3 + $0x1b4] ss:$8 sps:$4 sm:$0xff]   ;;  %v1580_v34 = vld [vmem:[#allocation3 + $0x40] ss:$8 sps:$4 sm:$0xff]   ;;  %v1530_v36 = vld [vmem:[#allocation3 + $0x1b0] ss:$8 sps:$4 sm:$0xff]  }
  0x33   :  { %701 = vmatpush1.bf16.msra.mxu1 %v1562_v22  ;;  %v1581_v35 = vld [vmem:[#allocation3 + $0x54] ss:$8 sps:$4 sm:$0xff]   ;;  %v1531_v37 = vld [vmem:[#allocation3 + $0x1c4] ss:$8 sps:$4 sm:$0xff]   ;;  %v1586_v38 = vld [vmem:[#allocation3 + $0x50] ss:$8 sps:$4 sm:$0xff]  }
  0x34   :  { %702 = vmatprep.subr.bf16.mxu1 %v1563_v23  ;;  %v1587_v39 = vld [vmem:[#allocation3 + $0x64] ss:$8 sps:$4 sm:$0xff]   ;;  %v1533_v40 = vld [vmem:[#allocation3 + $0x1c0] ss:$8 sps:$4 sm:$0xff]   ;;  %v1534_v41 = vld [vmem:[#allocation3 + $0x1d4] ss:$8 sps:$4 sm:$0xff]  }
  0x35   :  { %746 = vmatpush1.bf16.msra.mxu0 %v1506_v7  ;;  %v1592_v42 = vld [vmem:[#allocation3 + $0x60] ss:$8 sps:$4 sm:$0xff]   ;;  %v1593_v43 = vld [vmem:[#allocation3 + $0x74] ss:$8 sps:$4 sm:$0xff]   ;;  %v1536_v44 = vld [vmem:[#allocation3 + $0x1d0] ss:$8 sps:$4 sm:$0xff]  }
  0x36   :  { %747 = vmatprep.subr.bf16.mxu0 %v1507_v8  ;;  %v1537_v45 = vld [vmem:[#allocation3 + $0x1e4] ss:$8 sps:$4 sm:$0xff]   ;;  %v1598_v46 = vld [vmem:[#allocation3 + $0x70] ss:$8 sps:$4 sm:$0xff]   ;;  %v1539_v48 = vld [vmem:[#allocation3 + $0x1e0] ss:$8 sps:$4 sm:$0xff]  }
  0x37   :  { %703 = vmatpush1.bf16.msra.mxu1 %v1568_v26  ;;  %v1599_v47 = vld [vmem:[#allocation3 + $0x84] ss:$8 sps:$4 sm:$0xff]   ;;  %v1540_v49 = vld [vmem:[#allocation3 + $0x1f4] ss:$8 sps:$4 sm:$0xff]   ;;  %v1604_v50 = vld [vmem:[#allocation3 + $0x80] ss:$8 sps:$4 sm:$0xff]  }
  0x38   :  { %704 = vmatprep.subr.bf16.mxu1 %v1569_v27  ;;  %v1605_v51 = vld [vmem:[#allocation3 + $0x94] ss:$8 sps:$4 sm:$0xff]   ;;  %v1542_v52 = vld [vmem:[#allocation3 + $0x1f0] ss:$8 sps:$4 sm:$0xff]   ;;  %v1547_v53 = vld [vmem:[#allocation3 + $0x204] ss:$8 sps:$4 sm:$0xff]  }
  0x39   :  { %748 = vmatpush1.bf16.msra.mxu0 %v1509_v9  ;;  %v1610_v54 = vld [vmem:[#allocation3 + $0x90] ss:$8 sps:$4 sm:$0xff]   ;;  %v1611_v55 = vld [vmem:[#allocation3 + $0xa4] ss:$8 sps:$4 sm:$0xff]   ;;  %v1545_v58 = vld [vmem:[#allocation3 + $0x200] ss:$8 sps:$4 sm:$0xff]  }
  0x3a   :  { %749 = vmatprep.subr.bf16.mxu0 %v1510_v10  ;;  %v1852_v56 = vld [vmem:[%s1941_s1 + $0x10] sm:$0xff]  ;;  %v1616_v61 = vld [vmem:[#allocation3 + $0xa0] ss:$8 sps:$4 sm:$0xff]   ;;  %v1555_v1 = vld [vmem:[#allocation3 + $0x224] ss:$8 sps:$4 sm:$0xff]   ;;  %vm1761_vm1 = vmmov 0  }
  0x3b   :  { %705 = vmatpush1.bf16.msra.mxu1 %v1574_v30  ;;  %v1272_v59 = vcombine.high %v1852_v56, %v1852_v56  ;;  %v1550_v60 = vld [vmem:[#allocation3 + $0x214] ss:$8 sps:$4 sm:$0xff]   ;;  %v1548_v63 = vld [vmem:[#allocation3 + $0x210] ss:$8 sps:$4 sm:$0xff]   ;;  %v66_v0 = vld [vmem:[%s1941_s1] sm:$0xff]  ;;  %vm1195_vm2 = vcmask 523264  }
  0x3c   :  { %706 = vmatprep.subr.bf16.mxu1 %v1575_v31  ;;  %v1617_v62 = vld [vmem:[#allocation3 + $0xb4] ss:$8 sps:$4 sm:$0xff]   ;;  %v1268_v2 = vcombine.high %v66_v0, %v66_v0  ;;  %v1622_v3 = vld [vmem:[#allocation3 + $0xb0] ss:$8 sps:$4 sm:$0xff]   ;;  %v1623_v4 = vld [vmem:[#allocation3 + $0xc4] ss:$8 sps:$4 sm:$0xff]  }
  0x3d   :  { %750 = vmatpush1.bf16.msra.mxu0 %v1512_v11  ;;  %v1553_v5 = vld [vmem:[#allocation3 + $0x220] ss:$8 sps:$4 sm:$0xff]   ;;  %v1561_v6 = vld [vmem:[#allocation3 + $0x234] ss:$8 sps:$4 sm:$0xff]   ;;  %v1559_v9 = vld [vmem:[#allocation3 + $0x230] ss:$8 sps:$4 sm:$0xff]  }
  0x3e   :  { %751 = vmatprep.subr.bf16.mxu0 %v1513_v12  ;;  %730 = vmatprep.mubr.bf16.mxu1 %v1268_v2  ;;  %v1628_v7 = vld [vmem:[#allocation3 + $0xc0] ss:$8 sps:$4 sm:$0xff]   ;;  %v1629_v8 = vld [vmem:[#allocation3 + $0xd4] ss:$8 sps:$4 sm:$0xff]   ;;  %v1567_v10 = vld [vmem:[#allocation3 + $0x244] ss:$8 sps:$4 sm:$0xff]   ;;  %v170_v2 = vlaneseq }
  0x3f   :  { %707 = vmatpush1.bf16.msra.mxu1 %v1580_v34  ;;  %v1634_v11 = vld [vmem:[#allocation3 + $0xd0] ss:$8 sps:$4 sm:$0xff]   ;;  %v1565_v12 = vld [vmem:[#allocation3 + $0x240] ss:$8 sps:$4 sm:$0xff]   ;;  %v1637_v13 = vld [vmem:[#allocation3 + $0xe4] ss:$8 sps:$4 sm:$0xff]  }
  0x40   :  { %708 = vmatprep.subr.bf16.mxu1 %v1581_v35  ;;  %v1573_v14 = vld [vmem:[#allocation3 + $0x254] ss:$8 sps:$4 sm:$0xff]   ;;  %v1571_v17 = vld [vmem:[#allocation3 + $0x250] ss:$8 sps:$4 sm:$0xff]   ;;  %v1591_v27 = vld [vmem:[#allocation3 + $0x284] ss:$8 sps:$4 sm:$0xff]  }
  0x41   :  { %752 = vmatpush1.bf16.msra.mxu0 %v1515_v15  ;;  %v1642_v15 = vld [vmem:[#allocation3 + $0xe0] ss:$8 sps:$4 sm:$0xff]   ;;  %v1645_v19 = vld [vmem:[#allocation3 + $0xf0] ss:$8 sps:$4 sm:$0xff]   ;;  %v1585_v22 = vld [vmem:[#allocation3 + $0x274] ss:$8 sps:$4 sm:$0xff]  }
  0x42   :  { %753 = vmatprep.subr.bf16.mxu0 %v1516_v16  ;;  %v1643_v16 = vld [vmem:[#allocation3 + $0xf4] ss:$8 sps:$4 sm:$0xff]   ;;  %v1583_v26 = vld [vmem:[#allocation3 + $0x270] ss:$8 sps:$4 sm:$0xff]   ;;  %v1589_v30 = vld [vmem:[#allocation3 + $0x280] ss:$8 sps:$4 sm:$0xff]  }
  0x43   :  { %709 = vmatpush1.bf16.msra.mxu1 %v1586_v38  ;;  %v1649_v20 = vld [vmem:[#allocation6 + $0x40] sm:$0xff]   ;;  %v1603_v35 = vld [vmem:[#allocation3 + $0x2a4] ss:$8 sps:$4 sm:$0xff]   ;;  %v1601_v38 = vld [vmem:[#allocation3 + $0x2a0] ss:$8 sps:$4 sm:$0xff]  }
  0x44   :  { %710 = vmatprep.subr.bf16.mxu1 %v1587_v39  ;;  %v1650_v23 = vld [vmem:[#allocation6] sm:$0xff]  }
  0x45   :  { %754 = vmatpush1.bf16.msra.mxu0 %v1518_v18  ;;  %v1579_v18 = vld [vmem:[#allocation3 + $0x264] ss:$8 sps:$4 sm:$0xff]   ;;  %v1597_v31 = vld [vmem:[#allocation3 + $0x294] ss:$8 sps:$4 sm:$0xff]   ;;  %v1595_v34 = vld [vmem:[#allocation3 + $0x290] ss:$8 sps:$4 sm:$0xff]  }
  0x46   :  { %755 = vmatprep.subr.bf16.mxu0 %v1519_v21  ;;  %v1577_v21 = vld [vmem:[#allocation3 + $0x260] ss:$8 sps:$4 sm:$0xff]   ;;  %v1609_v39 = vld [vmem:[#allocation3 + $0x2b4] ss:$8 sps:$4 sm:$0xff]  }
  0x47   :  { %711 = vmatpush1.bf16.msra.mxu1 %v1592_v42  ;;  %v1615_v42 = vld [vmem:[#allocation3 + $0x2c4] ss:$8 sps:$4 sm:$0xff]  }
  0x48   :  { %712 = vmatprep.subr.bf16.mxu1 %v1593_v43  ;;  %v1613_v43 = vld [vmem:[#allocation3 + $0x2c0] ss:$8 sps:$4 sm:$0xff]  }
  0x49   :  { %756 = vmatpush1.bf16.msra.mxu0 %v1521_v24  ;;  %v1267_v24 = vcombine.low %v66_v0, %v66_v0 }
  0x4a   :  { %757 = vmatprep.subr.bf16.mxu0 %v1522_v25  ;;  %v1651_v25 = vld [vmem:[#allocation6 + $0x48] sm:$0xff]  }
  0x4b   :  { %713 = vmatpush1.bf16.msra.mxu1 %v1598_v46  ;;  %v1627_v46 = vld [vmem:[#allocation3 + $0x2e4] ss:$8 sps:$4 sm:$0xff]  }
  0x4c   :  { %714 = vmatprep.subr.bf16.mxu1 %v1599_v47  ;;  %v1625_v47 = vld [vmem:[#allocation3 + $0x2e0] ss:$8 sps:$4 sm:$0xff]  }
  0x4d   :  { %758 = vmatpush1.bf16.msra.mxu0 %v1524_v28  ;;  %v1652_v28 = vld [vmem:[#allocation6 + $0x8] sm:$0xff]  }
  0x4e   :  { %759 = vmatprep.subr.bf16.mxu0 %v1525_v29  ;;  %v1653_v29 = vld [vmem:[#allocation6 + $0x50] sm:$0xff]  }
  0x4f   :  { %715 = vmatpush1.bf16.msra.mxu1 %v1604_v50  ;;  %v1641_v50 = vld [vmem:[#allocation3 + $0x304] ss:$8 sps:$4 sm:$0xff]  }
  0x50   :  { %716 = vmatprep.subr.bf16.mxu1 %v1605_v51  ;;  %v1271_v51 = vcombine.low %v1852_v56, %v1852_v56  ;;  %v1663_v56 = vld [vmem:[#allocation6 + $0x78] sm:$0xff]  }
  0x51   :  { %760 = vmatpush1.bf16.msra.mxu0 %v1527_v32  ;;  %v1654_v32 = vld [vmem:[#allocation6 + $0x10] sm:$0xff]  }
  0x52   :  { %761 = vmatprep.subr.bf16.mxu0 %v1528_v33  ;;  %v1655_v33 = vld [vmem:[#allocation6 + $0x58] sm:$0xff]  }
  0x53   :  { %717 = vmatpush1.bf16.msra.mxu1 %v1610_v54  ;;  %v1648_v54 = vld [vmem:[%s1941_s1 + $0x18] ss:$0 sps:$4 sm:$0xff]  }
  0x54   :  { %718 = vmatprep.subr.bf16.mxu1 %v1611_v55  ;;  %v1659_v55 = vld [vmem:[#allocation6 + $0x68] sm:$0xff]  }
  0x55   :  { %762 = vmatpush1.bf16.msra.mxu0 %v1530_v36  ;;  %v1656_v36 = vld [vmem:[#allocation6 + $0x18] sm:$0xff]  }
  0x56   :  { %763 = vmatprep.subr.bf16.mxu0 %v1531_v37  ;;  %v1657_v37 = vld [vmem:[#allocation6 + $0x60] sm:$0xff]  }
  0x57   :  { %719 = vmatpush1.bf16.msra.mxu1 %v1616_v61  ;;  %v1760_v61 = vmov 0.0  }
  0x58   :  { %720 = vmatprep.subr.bf16.mxu1 %v1617_v62 }
  0x59   :  { %764 = vmatpush1.bf16.msra.mxu0 %v1533_v40  ;;  %v1658_v40 = vld [vmem:[#allocation6 + $0x20] sm:$0xff]  }
  0x5a   :  { %765 = vmatprep.subr.bf16.mxu0 %v1534_v41  ;;  %v1607_v41 = vld [vmem:[#allocation3 + $0x2b0] ss:$8 sps:$4 sm:$0xff]  }
  0x5b   :  { %721 = vmatpush1.bf16.msra.mxu1 %v1622_v3  ;;  %v171_v3 = vshrl.u32 %v170_v2, 7 }
  0x5c   :  { %722 = vmatprep.subr.bf16.mxu1 %v1623_v4 }
  0x5d   :  { %766 = vmatpush1.bf16.msra.mxu0 %v1536_v44  ;;  %v1621_v44 = vld [vmem:[#allocation3 + $0x2d4] ss:$8 sps:$4 sm:$0xff]   ;;  %v172_v4 = vsub.s32 0, %v171_v3 }
  0x5e   :  { %767 = vmatprep.subr.bf16.mxu0 %v1537_v45  ;;  %v1619_v45 = vld [vmem:[#allocation3 + $0x2d0] ss:$8 sps:$4 sm:$0xff]  }
  0x5f   :  { %723 = vmatpush1.bf16.msra.mxu1 %v1628_v7 }
  0x60   :  { %724 = vmatprep.subr.bf16.mxu1 %v1629_v8 }
  0x61   :  { %768 = vmatpush1.bf16.msra.mxu0 %v1539_v48  ;;  %v1633_v48 = vld [vmem:[#allocation3 + $0x2f4] ss:$8 sps:$4 sm:$0xff]  }
  0x62   :  { %769 = vmatprep.subr.bf16.mxu0 %v1540_v49  ;;  %v1631_v49 = vld [vmem:[#allocation3 + $0x2f0] ss:$8 sps:$4 sm:$0xff]  }
  0x63   :  { %725 = vmatpush1.bf16.msra.mxu1 %v1634_v11 }
  0x64   :  { %726 = vmatprep.subr.bf16.mxu1 %v1637_v13 }
  0x65   :  { %770 = vmatpush1.bf16.msra.mxu0 %v1542_v52  ;;  %v1639_v52 = vld [vmem:[#allocation3 + $0x300] ss:$8 sps:$4 sm:$0xff]  }
  0x66   :  { %780 = vmatprep.subr.bf16.mxu0 %v1547_v53  ;;  %v1759_v53 = vmov 0  }
  0x67   :  { %727 = vmatpush1.bf16.msra.mxu1 %v1642_v15 }
  0x68   :  { %772 = vmatmul.mubr.bf16.vlgmr.msra.gmra.mrb[0].mxu0 %v1269_v57  ;;  %728 = vmatprep.subr.bf16.mxu1 %v1643_v16  ;;  %v1660_v57 = vld [vmem:[#allocation6 + $0x28] sm:$0xff]  }
  0x69   :  { %781 = vmatpush1.bf16.msra.mxu0 %v1545_v58  ;;  %812 = vmatprep.mubr.bf16.mxu0 %v1272_v59  ;;  %v1661_v58 = vld [vmem:[#allocation6 + $0x70] sm:$0xff]  }
  0x6a   :  { %782 = vmatprep.subr.bf16.mxu0 %v1550_v60  ;;  %v1662_v59 = vld [vmem:[#allocation6 + $0x30] sm:$0xff]   ;;  %v1664_v60 = vld [vmem:[#allocation6 + $0x38] sm:$0xff]  }
  0x6b   :  { %729 = vmatpush1.bf16.msra.mxu1 %v1645_v19 }
  0x6c   :  { %1405 = vmatprep.subr.bf16.mxu1 %v1649_v20  ;;  %v1665_v20 = vld [vmem:[%s1946_s6] sm:$0xff]  }
  0x6d   :  { %783 = vmatpush1.bf16.msra.mxu0 %v1548_v63 }
  0x6e   :  { %784 = vmatprep.subr.bf16.mxu0 %v1555_v1  ;;  %731 = vmatmul.mubr.bf16.vlgmr.msra.gmra.mrb[0].mxu1 %v1267_v24  ;;  %v1668_v24 = vld [vmem:[%s1946_s6 + $0x18] sm:$0xff]  }
  0x6f   :  { %1406 = vmatpush3.bf16.msra.mxu1 %v1650_v23  ;;  %v1667_v23 = vld [vmem:[%s1946_s6 + $0x10] sm:$0xff]  }
  0x70   :  { %1407 = vmatprep.subr.bf16.mxu1 %v1651_v25  ;;  %v1669_v25 = vld [vmem:[%s1946_s6 + $0x20] sm:$0xff]  }
  0x71   :  { %785 = vmatpush1.bf16.msra.mxu0 %v1553_v5  ;;  %v168_v5 = vld [vmem:[%s1943_s3] sm:$0x3] }
  0x72   :  { %786 = vmatprep.subr.bf16.mxu0 %v1561_v6  ;;  %v176_v6 = vsub.s32 1, %v171_v3  ;;  %v173_v7 = vrot.slane %v168_v5, %v172_v4 }
  0x73   :  { %1408 = vmatpush3.bf16.msra.mxu1 %v1652_v28  ;;  %v1672_v28 = vld [vmem:[%s1946_s6 + $0x38] sm:$0xff]  }
  0x74   :  { %1409 = vmatprep.subr.bf16.mxu1 %v1653_v29  ;;  %v177_v8 = vrot.slane %v168_v5, %v176_v6 }
  0x75   :  { %787 = vmatpush1.bf16.msra.mxu0 %v1559_v9 }
  0x76   :  { %788 = vmatprep.subr.bf16.mxu0 %v1567_v10 }
  0x77   :  { %1410 = vmatpush3.bf16.msra.mxu1 %v1654_v32 }
  0x78   :  { %1411 = vmatprep.subr.bf16.mxu1 %v1655_v33 }
  0x79   :  { %789 = vmatpush1.bf16.msra.mxu0 %v1565_v12 }
  0x7a   :  { %790 = vmatprep.subr.bf16.mxu0 %v1573_v14 }
  0x7b   :  { %1412 = vmatpush3.bf16.msra.mxu1 %v1656_v36 }
  0x7c   :  { %1413 = vmatprep.subr.bf16.mxu1 %v1657_v37  ;;  %v1673_v37 = vld [vmem:[%s1948_s8] sm:$0xff]  }
  0x7d   :  { %791 = vmatpush1.bf16.msra.mxu0 %v1571_v17 }
  0x7e   :  { %792 = vmatprep.subr.bf16.mxu0 %v1579_v18 }
  0x7f   :  { %1414 = vmatpush3.bf16.msra.mxu1 %v1658_v40  ;;  %v1675_v40 = vld [vmem:[%s1948_s8 + $0x10] sm:$0xff]  }
  0x80   :  { %1415 = vmatprep.subr.bf16.mxu1 %v1659_v55 }
  0x81   :  { %793 = vmatpush1.bf16.msra.mxu0 %v1577_v21 }
  0x82   :  { %794 = vmatprep.subr.bf16.mxu0 %v1585_v22  ;;  %v1666_v22 = vld [vmem:[%s1946_s6 + $0x8] sm:$0xff]  }
  0x83   :  { %1416 = vmatpush3.bf16.msra.mxu1 %v1660_v57 }
  0x84   :  { %1417 = vmatprep.subr.bf16.mxu1 %v1661_v58 }
  0x85   :  { %795 = vmatpush1.bf16.msra.mxu0 %v1583_v26  ;;  %v1670_v26 = vld [vmem:[%s1946_s6 + $0x28] sm:$0xff]  }
  0x86   :  { %796 = vmatprep.subr.bf16.mxu0 %v1591_v27  ;;  %v1671_v27 = vld [vmem:[%s1946_s6 + $0x30] sm:$0xff]  }
  0x87   :  { %1418 = vmatpush3.bf16.msra.mxu1 %v1662_v59 }
  0x88   :  { %1419 = vmatprep.subr.bf16.mxu1 %v1663_v56 }
  0x89   :  { %797 = vmatpush1.bf16.msra.mxu0 %v1589_v30  ;;  %v1373_v30 = vld [vmem:[%s1945_s5] ss:$0 sm:$0xff] }
  0x8a   :  { %798 = vmatprep.subr.bf16.mxu0 %v1597_v31 }
  0x8b   :  { %1420 = vmatpush3.bf16.msra.mxu1 %v1664_v60 }
  0x8c   :  { %1441 = vmatprep.subr.bf16.mxu1 %v1760_v61 }
  0x8d   :  { %799 = vmatpush1.bf16.msra.mxu0 %v1595_v34 }
  0x8e   :  { %800 = vmatprep.subr.bf16.mxu0 %v1603_v35 }
  0x91   :  { %801 = vmatpush1.bf16.msra.mxu0 %v1601_v38 }
  0x92   :  { %802 = vmatprep.subr.bf16.mxu0 %v1609_v39  ;;  %v1674_v39 = vld [vmem:[%s1948_s8 + $0x8] sm:$0xff]  }
  0x95   :  { %803 = vmatpush1.bf16.msra.mxu0 %v1607_v41  ;;  %v1676_v41 = vld [vmem:[%s1948_s8 + $0x18] sm:$0xff]  }
  0x96   :  { %804 = vmatprep.subr.bf16.mxu0 %v1615_v42  ;;  %v1390_v42 = vld [vmem:[%s1947_s7] ss:$0 sm:$0xff]  ;;  %s1762_s7 = smov [#allocation8]  }
  0x97   :  { %s1257_s8 = sshll.u32 %s1762_s7, 4  ;;  %s1258_s8 = int_to_ptr.vmem [resolvable:$true] %s1257_s8 }
  0x98   :  { %p1730_p3 = scmp.lt.s32.totalorder %s1258_s8, %s1258_s8 }
  0x99   :  { %805 = vmatpush1.bf16.msra.mxu0 %v1613_v43 }
  0x9a   :  { %806 = vmatprep.subr.bf16.mxu0 %v1621_v44 }
  0x9d   :  { %807 = vmatpush1.bf16.msra.mxu0 %v1619_v45 }
  0x9e   :  { %808 = vmatprep.subr.bf16.mxu0 %v1627_v46 }
  0xa1   :  { %809 = vmatpush1.bf16.msra.mxu0 %v1625_v47 }
  0xa2   :  { %810 = vmatprep.subr.bf16.mxu0 %v1633_v48 }
  0xa5   :  { %811 = vmatpush1.bf16.msra.mxu0 %v1631_v49 }
  0xa6   :  { %821 = vmatprep.subr.bf16.mxu0 %v1641_v50  ;;  %v1399_v50 = vld [vmem:[%s1949_s9] ss:$0 sm:$0xff]  ;;  %s1725_s9 = scalar_lea.vmem %s1258_s8, 128 }
  0xa7   :  { %p1726_p2 = scmp.ne.s32.totalorder %s1258_s8, %s1725_s9  ;;  %p1731_p4 = scmp.lt.s32.totalorder %s1725_s9, %s1725_s9 }
  0xa8   :  { %813 = vmatmul.mubr.bf16.vlgmr.msra.gmra.mrb[0].mxu0 %v1271_v51 }
  0xa9   :  { %822 = vmatpush1.bf16.msra.mxu0 %v1639_v52  ;;  %853 = vmatprep.mubr.bf16.mxu0 %v1759_v53  ;;  %p1732_p5 = por %p1731_p4, %p1730_p3 }
  0xab   :  { %p1733_p6 = pnand %p1732_p5, %p1726_p2 }
  0xb4   :  { %1372 = vmatmul.mubr.msk.bf16.vlgmr.msra.gmra.mrb[0].mxu0 %vm694_vm0, %v1648_v54 }
 0x141   :  { %v732_v62 = vpop.f32.mrb[0].mxu1 }
 0x142   :  { %v734_v63 = vpop.f32.mrb[1].mxu1  ;;  %v733_v9 = vadd.f32 %v732_v62, %v173_v7 }
 0x143   :  { %v736_v0 = vpop.f32.mrb[2].mxu1  ;;  %v735_v10 = vadd.f32 %v734_v63, %v177_v8 }
 0x144   :  { %v737_v1 = vpop.f32.mrb[3].mxu1 }
 0x187   :  { %v855_v11 = vpop.f32.mrb[0].mxu0 }
 0x188   :  { %v1474_v12 = vadd.f32 %v855_v11, %v733_v9  ;;  %v857_v13 = vpop.f32.mrb[1].mxu0 }
 0x189   :  { %v1476_v14 = vadd.f32 %v857_v13, %v735_v10  ;;  %v859_v15 = vpop.f32.mrb[2].mxu0 }
 0x18a   :  { %v862_v16 = vmax.f32 %v1474_v12, 0.0  ;;  %v860_v17 = vpop.f32.mrb[3].mxu0 }
 0x18b   :  { %v863_v18 = vmax.f32 %v1476_v14, 0.0 }
 0x18c   :  { %v864_v21 = vpack.c.bf16 %v862_v16, %v862_v16 }
 0x18d   :  { %v865_v19 = vpack.c.bf16 %v863_v18, %v863_v18 }
 0x18f   :  { %1033 = vmatprep.mubr.bf16.mxu1 %v865_v19 }
 0x190   :  { %1034 = vmatmul.mubr.bf16.vlgmr.msra.gmra.mrb[4].mxu1 %v864_v21 }
 0x191   :  { %1442 = vmatpush3.bf16.msra.mxu1 %v1665_v20  ;;  %1457 = vmatprep.mubr.msk.bf16.mxu1 %vm1761_vm1, %v1760_v61 }
 0x192   :  { %1443 = vmatprep.subr.bf16.mxu1 %v1760_v61 }
 0x195   :  { %1444 = vmatpush3.bf16.msra.mxu1 %v1666_v22 }
 0x196   :  { %1445 = vmatprep.subr.bf16.mxu1 %v1760_v61 }
 0x199   :  { %1446 = vmatpush3.bf16.msra.mxu1 %v1667_v23 }
 0x19a   :  { %1447 = vmatprep.subr.bf16.mxu1 %v1760_v61 }
 0x19d   :  { %1448 = vmatpush3.bf16.msra.mxu1 %v1668_v24 }
 0x19e   :  { %1449 = vmatprep.subr.bf16.mxu1 %v1760_v61 }
 0x1a1   :  { %1450 = vmatpush3.bf16.msra.mxu1 %v1669_v25 }
 0x1a2   :  { %1451 = vmatprep.subr.bf16.mxu1 %v1760_v61 }
 0x1a5   :  { %1452 = vmatpush3.bf16.msra.mxu1 %v1670_v26 }
 0x1a6   :  { %1453 = vmatprep.subr.bf16.mxu1 %v1760_v61 }
 0x1a9   :  { %1454 = vmatpush3.bf16.msra.mxu1 %v1671_v27 }
 0x1aa   :  { %1455 = vmatprep.subr.bf16.mxu1 %v1760_v61 }
 0x1ad   :  { %1456 = vmatpush3.bf16.msra.mxu1 %v1672_v28 }
 0x1ae   :  { %1461 = vmatprep.subr.bf16.mxu1 %v1760_v61 }
 0x263   :  { %v1421_v29 = vpop.f32.mrb[4].mxu1 }
 0x264   :  { %v1422_v31 = vpop.f32.mrb[5].mxu1 }
 0x265   :  { %v1423_v32 = vadd.f32 %v1422_v31, %v1421_v29  ;;  %v1424_v33 = vpop.f32.mrb[6].mxu1 }
 0x266   :  { %v1425_v34 = vpop.f32.mrb[7].mxu1 }
 0x267   :  { %v1036_v35 = vadd.f32 %v1423_v32, %v1373_v30 }
 0x269   :  { %v1041_v36 = vmax.f32 %v1036_v35, 0.0 }
 0x26b   :  { %v1042_v38 = vpack.c.bf16 %v1041_v36, %v1041_v36 }
 0x26d   :  { %1458 = vmatmul.mubr.bf16.vlgmr.msra.gmra.mrb[8].mxu1 %v1042_v38 }
 0x26e   :  { %1462 = vmatpush3.bf16.msra.mxu1 %v1673_v37  ;;  %1469 = vmatprep.mubr.msk.bf16.mxu1 %vm1761_vm1, %v1760_v61 }
 0x26f   :  { %1463 = vmatprep.subr.bf16.mxu1 %v1760_v61 }
 0x272   :  { %1464 = vmatpush3.bf16.msra.mxu1 %v1674_v39 }
 0x273   :  { %1465 = vmatprep.subr.bf16.mxu1 %v1760_v61 }
 0x276   :  { %1466 = vmatpush3.bf16.msra.mxu1 %v1675_v40 }
 0x277   :  { %1467 = vmatprep.subr.bf16.mxu1 %v1760_v61 }
 0x27a   :  { %1468 = vmatpush3.bf16.msra.mxu1 %v1676_v41 }
 0x340   :  { %v1148_v43 = vpop.f32.mrb[8].mxu1 }
 0x341   :  { %v1149_v44 = vadd.f32 %v1390_v42, %v1148_v43  ;;  %v1459_v45 = vpop.f32.mrb[9].mxu1 }
 0x342   :  { %v1151_v46 = vpop.f32.mrb[10].mxu1 }
 0x343   :  { %v1154_v47 = vmax.f32 %v1149_v44, 0.0  ;;  %v1460_v48 = vpop.f32.mrb[11].mxu1 }
 0x345   :  { %v1155_v49 = vpack.c.bf16 %v1154_v47, %v1154_v47 }
 0x347   :  { %1470 = vmatmul.mubr.msk.bf16.vlgmr.msra.gmra.mrb[12].mxu1 %vm1195_vm2, %v1155_v49 }
 0x41a   :  { %v1233_v51 = vpop.f32.mrb[12].mxu1 }
 0x41b   :  { %v1234_v52 = vadd.f32 %v1399_v50, %v1233_v51  ;;  %v1471_v53 = vpop.f32.mrb[13].mxu1 }
 0x41c   :  { %v1236_v54 = vpop.f32.mrb[14].mxu1 }
 0x41d   :  { %1239 = vmax.xlane.f32.xlu0 %v1234_v52  ;;  %v1472_v55 = vpop.f32.mrb[15].mxu1 }
 0x4aa   :  { %v1240_v57 = vpop.xlane.xlu0 %1239 }
 0x4ab   :  { %v1241_v58 = vsub.f32 %v1234_v52, %v1240_v57 }
 0x4ad   :  { %v1242_v59 = vmul.f32 1.442695, %v1241_v58 }
 0x4af   :  { %1677 = vpow2.f32 %v1242_v59 }
 0x4b9   :  { %v1678_v56 = vpop.eup %1677 }
 0x4ba   :  { %1244 = vadd.xlane.f32.xlu0 %v1678_v56 }
 0x547   :  { %v1245_v60 = vpop.xlane.xlu0 %1244 }
 0x548   :  { %1679 = vlog2.f32 %v1245_v60 }
 0x552   :  { %v1680_v61 = vpop.eup %1679 }
 0x553   :  { %v1247_v62 = vmul.f32 0.6931472, %v1680_v61 }
 0x555   :  { %v1248_v63 = vadd.f32 %v1247_v62, %v1240_v57 }
 0x557   :  { %v1249_v0 = vsub.f32 %v1234_v52, %v1248_v63 }
 0x559   :  { %1250 = vst [vmem:[#allocation8] sm:$0xff] %v1249_v0 }
 0x55a   :  { %1736 = shalt.err (!%p1733_p6)
}
 0x55b   :  { %s1737_s29 = scalar_lea.hbm %s1950_s10, 128 }
 0x55c   :  { %p1738_p7 = scmp.ne.s32.totalorder %s1950_s10, %s1737_s29  ;;  %p1741_p8 = scmp.lt.u32.totalorder %s1737_s29, %s1950_s10 }
 0x55e   :  { %p1743_p9 = pnand %p1741_p8, %p1738_p7 }
 0x560   :  { %1746 = shalt.err (!%p1743_p9)
}
 0x561   :  { %1260 = dma.vmem_to_hbm [thread:$0]  %s1258_s8, 128, %s1950_s10, [#allocation5]  }
 0x562   :  { %1751 = dma.done.wait [#allocation5], 128  }
 0x563   :  { %1752 = vsyncadd [#allocation5], 4294967168 }
 0x564   :  { %1264 = vsyncpa [#allocation4], 1 }
 0x565   :  { %1265 = vsyncpa [#allocation7], 1 }
 0x566   :  { %1266 = vsyncpa [#allocation5], 1 }

</bundles_post_ra>
